<compile_context>
chip_gen: v5e
topology: v5e:2x2
jax: 0.10.0
libtpu: 0.0.40
codegen_flags: <defaults>
</compile_context>

<pallas_src>
import jax
import jax.numpy as jnp
from jax.experimental import pallas as pl
from jax.experimental.pallas import tpu as pltpu


# ---------------------------------------------------------------------------
# Kernel: one grid step == one batch tile, full generator fused.
#   refs: feats (Bt,H), prompt (Bt,Dp),
#         w1f (H,hid), w1p (Dp,hid), b1 (1,hid),
#         wco (hid,Wpad), bco (1,Wpad)     # [fc2 | fused quality head | 0-pad]
#   outs: slab (Bt, Wpad)  with  [:, :out] = gen_feat, [:, out:out+Dp] = gen_prompt
# ---------------------------------------------------------------------------
def mmg_kernel(feats_ref, prompt_ref,
               w1f_ref, w1p_ref, b1_ref,
               wco_ref, bco_ref,
               slab_ref):
    # fc1 applied to the (implicit) concat [feats, prompt]: split weight rows
    # instead of concatenating activations.
    h = jnp.dot(feats_ref[...], w1f_ref[...], preferred_element_type=jnp.float32)
    h = h + jnp.dot(prompt_ref[...], w1p_ref[...], preferred_element_type=jnp.float32)
    h = jnp.maximum(h + b1_ref[...], 0.0)                 # ReLU (VPU)

    # Combined fc2 + pre-fused quality head -> one lane-dense output slab.
    slab = jnp.dot(h, wco_ref[...], preferred_element_type=jnp.float32) + bco_ref[...]
    slab_ref[...] = slab.astype(slab_ref.dtype)


# ---------------------------------------------------------------------------
# Wrapper: weight prep (torch (out,in) -> (in,out), head fusion, lane padding),
# BlockSpecs, grid.
# ---------------------------------------------------------------------------
def missing_modality_generator(available_feats, quality_prompt, params,
                               *, batch_tile=2048):
    B, H = available_feats.shape
    Bp, Dp = quality_prompt.shape
    assert B == Bp
    hidden = params["w1"].shape[0]             # torch: (hidden, H + Dp)
    out_dim = params["w2"].shape[0]            # torch: (out,    hidden)
    assert params["w1"].shape[1] == H + Dp
    assert params["w3"].shape == (Dp, out_dim)

    dtype = available_feats.dtype

    # ---- one-off weight prep (tiny; outside the hot activation path) -------
    w1t = params["w1"].T.astype(jnp.float32)   # (H+Dp, hidden)
    w1f = w1t[:H]                              # rows multiplying available_feats
    w1p = w1t[H:]                              # rows multiplying quality_prompt
    b1 = params["b1"].reshape(1, hidden).astype(jnp.float32)

    w2t = params["w2"].T.astype(jnp.float32)   # (hidden, out_dim)
    b2 = params["b2"].reshape(1, out_dim).astype(jnp.float32)
    w3t = params["w3"].T.astype(jnp.float32)   # (out_dim, Dp)
    b3 = params["b3"].reshape(1, Dp).astype(jnp.float32)

    # Pre-fuse the quality head: gen_prompt = h @ (w2t @ w3t) + (b2 @ w3t + b3)
    w23 = w2t @ w3t                            # (hidden, Dp)
    b23 = b2 @ w3t + b3                        # (1, Dp)

    # Pack fc2 and fused-head columns into one lane-dense slab (width % 128 == 0).
    wide = out_dim + Dp
    w_pad = pl.cdiv(wide, 128) * 128
    wco = jnp.pad(jnp.concatenate([w2t, w23], axis=1), ((0, 0), (0, w_pad - wide)))
    bco = jnp.pad(jnp.concatenate([b2, b23], axis=1), ((0, 0), (0, w_pad - wide)))

    # ---- batch tiling -------------------------------------------------------
    bt = min(B, batch_tile)
    if B >= 16:
        # Guarantee >= 2 batch tiles so the "parallel" grid axis can feed both
        # v7x TensorCores; zero cost on single-TC chips.
        bt = min(bt, max(8, 8 * pl.cdiv(pl.cdiv(B, 2), 8)))
    if bt < B:
        bt = max(8, (bt // 8) * 8)             # sublane-aligned tiles
    grid = (pl.cdiv(B, bt),)

    def batch_spec(cols):
        return pl.BlockSpec((bt, cols), lambda b: (b, 0))

    def full_spec(shape):
        ndim = len(shape)
        return pl.BlockSpec(shape, lambda b, _n=ndim: (0,) * _n)

    # ---- advisory cost estimate --------------------------------------------
    flops = 2 * B * (H * hidden + Dp * hidden + hidden * w_pad)
    weight_bytes = 4 * ((H + Dp) * hidden + hidden + hidden * w_pad + w_pad)
    io_bytes = 4 * B * (H + Dp + w_pad)
    cost = pl.CostEstimate(flops=flops, transcendentals=0,
                           bytes_accessed=weight_bytes + io_bytes)

    # ---- VMEM budget: derived from blocks, clamped to queried capacity -----
    try:
        vmem_cap = int(pltpu.get_tpu_info().vmem_capacity_bytes)
    except Exception:
        vmem_cap = 64 << 20                    # conservative (v7x) fallback
    act_block_bytes = 4 * bt * (H + Dp + w_pad)
    vmem_limit = 2 * (weight_bytes + act_block_bytes) + 4 * bt * hidden + (4 << 20)
    vmem_limit = int(min(max(vmem_limit, 16 << 20), int(0.7 * vmem_cap)))

    slab = pl.pallas_call(
        mmg_kernel,
        out_shape=jax.ShapeDtypeStruct((B, w_pad), dtype),
        grid=grid,
        in_specs=[
            batch_spec(H),                     # available_feats
            batch_spec(Dp),                    # quality_prompt
            full_spec((H, hidden)),            # w1 (feats rows)
            full_spec((Dp, hidden)),           # w1 (prompt rows)
            full_spec((1, hidden)),            # b1
            full_spec((hidden, w_pad)),        # combined fc2 | fused head
            full_spec((1, w_pad)),             # combined biases
        ],
        out_specs=pl.BlockSpec((bt, w_pad), lambda b: (b, 0)),
        compiler_params=pltpu.CompilerParams(
            dimension_semantics=("parallel",),
            vmem_limit_bytes=vmem_limit),
        cost_estimate=cost,
    )(available_feats.astype(jnp.float32), quality_prompt.astype(jnp.float32),
      w1f, w1p, b1, wco, bco)

    gen_feat = slab[:, :out_dim]
    gen_prompt = slab[:, out_dim:wide]
    return gen_feat, gen_prompt


# ---------------------------------------------------------------------------
# Deterministic parameter construction (synthetic, PyTorch (out, in) layout)
# ---------------------------------------------------------------------------
def make_params(key, prompt_dim, hidden_dim, output_dim):
    ks = jax.random.split(key, 6)

    def init(k, shape, scale=0.05):
        return scale * jax.random.normal(k, shape, jnp.float32)

    return {
        "w1": init(ks[0], (hidden_dim, prompt_dim + hidden_dim)),
        "b1": init(ks[1], (hidden_dim,)),
        "w2": init(ks[2], (output_dim, hidden_dim)),
        "b2": init(ks[3], (output_dim,)),
        "w3": init(ks[4], (prompt_dim, output_dim)),   # quality_head
        "b3": init(ks[5], (prompt_dim,)),
    }


def reference(available_feats, quality_prompt, params):
    x = jnp.concatenate([available_feats, quality_prompt], axis=-1)
    h = jnp.maximum(x @ params["w1"].T + params["b1"], 0.0)
    gen_feat = h @ params["w2"].T + params["b2"]
    gen_prompt = gen_feat @ params["w3"].T + params["b3"]
    return gen_feat, gen_prompt


if __name__ == "__main__":
    BATCH, PROMPT_DIM, HIDDEN_DIM, OUTPUT_DIM = 4, 16, 32, 64

    key = jax.random.PRNGKey(0)
    k_f, k_q, k_p = jax.random.split(key, 3)
    available_feats = jax.random.normal(k_f, (BATCH, HIDDEN_DIM), jnp.float32)
    quality_prompt = jax.random.normal(k_q, (BATCH, PROMPT_DIM), jnp.float32)
    params = make_params(k_p, PROMPT_DIM, HIDDEN_DIM, OUTPUT_DIM)

    gen_feat, gen_prompt = missing_modality_generator(
        available_feats, quality_prompt, params)
    jax.block_until_ready((gen_feat, gen_prompt))

    assert gen_feat.shape == (BATCH, OUTPUT_DIM) and gen_feat.dtype == jnp.float32
    assert gen_prompt.shape == (BATCH, PROMPT_DIM) and gen_prompt.dtype == jnp.float32

    ref_feat, ref_prompt = reference(available_feats, quality_prompt, params)
    assert jnp.allclose(gen_feat, ref_feat, rtol=1e-3, atol=1e-3)
    assert jnp.allclose(gen_prompt, ref_prompt, rtol=1e-3, atol=1e-3)

    print("KERNEL_OK")
</pallas_src>

<mosaic_0001>
module attributes {stable_mosaic.version = 11 : i64} {
  func.func @mmg_kernel(%arg0: i32, %arg1: memref<4x32xf32, #tpu.memory_space<vmem>>, %arg2: memref<4x16xf32, #tpu.memory_space<vmem>>, %arg3: memref<32x32xf32, #tpu.memory_space<vmem>>, %arg4: memref<16x32xf32, #tpu.memory_space<vmem>>, %arg5: memref<1x32xf32, #tpu.memory_space<vmem>>, %arg6: memref<32x128xf32, #tpu.memory_space<vmem>>, %arg7: memref<1x128xf32, #tpu.memory_space<vmem>>, %arg8: memref<4x128xf32, #tpu.memory_space<vmem>>) attributes {dimension_semantics = [#tpu.dimension_semantics<parallel>], iteration_bounds = array<i64: 1>, scalar_prefetch = 0 : i64, scratch_operands = 0 : i64, tpu.core_type = #tpu.core_type<tc>, window_params = [{transform_indices = @transform_0, window_bounds = array<i64: 4, 32>}, {transform_indices = @transform_1, window_bounds = array<i64: 4, 16>}, {pipeline_mode = #tpu.pipeline_mode<synchronous>, transform_indices = @transform_2, window_bounds = array<i64: 32, 32>}, {pipeline_mode = #tpu.pipeline_mode<synchronous>, transform_indices = @transform_3, window_bounds = array<i64: 16, 32>}, {pipeline_mode = #tpu.pipeline_mode<synchronous>, transform_indices = @transform_4, window_bounds = array<i64: 1, 32>}, {pipeline_mode = #tpu.pipeline_mode<synchronous>, transform_indices = @transform_5, window_bounds = array<i64: 32, 128>}, {pipeline_mode = #tpu.pipeline_mode<synchronous>, transform_indices = @transform_6, window_bounds = array<i64: 1, 128>}, {transform_indices = @transform_7, window_bounds = array<i64: 4, 128>}]} {
    %c0 = arith.constant 0 : index
    %c0_0 = arith.constant 0 : index
    %0 = vector.load %arg1[%c0, %c0_0] : memref<4x32xf32, #tpu.memory_space<vmem>>, vector<4x32xf32>
    %c0_1 = arith.constant 0 : index
    %c0_2 = arith.constant 0 : index
    %1 = vector.load %arg3[%c0_1, %c0_2] : memref<32x32xf32, #tpu.memory_space<vmem>>, vector<32x32xf32>
    %cst = arith.constant dense<0.000000e+00> : vector<4x32xf32>
    %2 = tpu.matmul %0, %1, %cst {dimension_numbers = #tpu.dot_dimension_numbers<[1], [0], [0], [1], [0, 0, 1, 1], [], []>} : vector<4x32xf32>, vector<32x32xf32>, vector<4x32xf32> -> vector<4x32xf32>
    %c0_3 = arith.constant 0 : index
    %c0_4 = arith.constant 0 : index
    %3 = vector.load %arg2[%c0_3, %c0_4] : memref<4x16xf32, #tpu.memory_space<vmem>>, vector<4x16xf32>
    %c0_5 = arith.constant 0 : index
    %c0_6 = arith.constant 0 : index
    %4 = vector.load %arg4[%c0_5, %c0_6] : memref<16x32xf32, #tpu.memory_space<vmem>>, vector<16x32xf32>
    %cst_7 = arith.constant dense<0.000000e+00> : vector<4x32xf32>
    %5 = tpu.matmul %3, %4, %cst_7 {dimension_numbers = #tpu.dot_dimension_numbers<[1], [0], [0], [1], [0, 0, 1, 1], [], []>} : vector<4x16xf32>, vector<16x32xf32>, vector<4x32xf32> -> vector<4x32xf32>
    %6 = arith.addf %2, %5 : vector<4x32xf32>
    %c0_8 = arith.constant 0 : index
    %c0_9 = arith.constant 0 : index
    %7 = vector.load %arg5[%c0_8, %c0_9] : memref<1x32xf32, #tpu.memory_space<vmem>>, vector<1x32xf32>
    %8 = vector.broadcast %7 : vector<1x32xf32> to vector<4x32xf32>
    %9 = arith.addf %6, %8 : vector<4x32xf32>
    %cst_10 = arith.constant 0.000000e+00 : f32
    %10 = vector.broadcast %cst_10 : f32 to vector<4x32xf32>
    %11 = arith.maximumf %9, %10 : vector<4x32xf32>
    %c0_11 = arith.constant 0 : index
    %c0_12 = arith.constant 0 : index
    %12 = vector.load %arg6[%c0_11, %c0_12] : memref<32x128xf32, #tpu.memory_space<vmem>>, vector<32x128xf32>
    %cst_13 = arith.constant dense<0.000000e+00> : vector<4x128xf32>
    %13 = tpu.matmul %11, %12, %cst_13 {dimension_numbers = #tpu.dot_dimension_numbers<[1], [0], [0], [1], [0, 0, 1, 1], [], []>} : vector<4x32xf32>, vector<32x128xf32>, vector<4x128xf32> -> vector<4x128xf32>
    %c0_14 = arith.constant 0 : index
    %c0_15 = arith.constant 0 : index
    %14 = vector.load %arg7[%c0_14, %c0_15] : memref<1x128xf32, #tpu.memory_space<vmem>>, vector<1x128xf32>
    %15 = vector.broadcast %14 : vector<1x128xf32> to vector<4x128xf32>
    %16 = arith.addf %13, %15 : vector<4x128xf32>
    %c0_16 = arith.constant 0 : index
    %c0_17 = arith.constant 0 : index
    %17 = vector.load %arg8[%c0_16, %c0_17] : memref<4x128xf32, #tpu.memory_space<vmem>>, vector<4x128xf32>
    tpu.vector_store %arg8[%c0_16, %c0_17], %16 {strides = array<i32>} : memref<4x128xf32, #tpu.memory_space<vmem>>, vector<4x128xf32>,
    return
  }
  func.func @transform_0(%arg0: i32) -> (i32, i32) {
    %c0_i32 = arith.constant 0 : i32
    %c0_i32_0 = arith.constant 0 : i32
    return %arg0, %c0_i32 : i32, i32
  }
  func.func @transform_1(%arg0: i32) -> (i32, i32) {
    %c0_i32 = arith.constant 0 : i32
    %c0_i32_0 = arith.constant 0 : i32
    return %arg0, %c0_i32 : i32, i32
  }
  func.func @transform_2(%arg0: i32) -> (i32, i32) {
    %c0_i32 = arith.constant 0 : i32
    %c0_i32_0 = arith.constant 0 : i32
    %c0_i32_1 = arith.constant 0 : i32
    return %c0_i32, %c0_i32_0 : i32, i32
  }
  func.func @transform_3(%arg0: i32) -> (i32, i32) {
    %c0_i32 = arith.constant 0 : i32
    %c0_i32_0 = arith.constant 0 : i32
    %c0_i32_1 = arith.constant 0 : i32
    return %c0_i32, %c0_i32_0 : i32, i32
  }
  func.func @transform_4(%arg0: i32) -> (i32, i32) {
    %c0_i32 = arith.constant 0 : i32
    %c0_i32_0 = arith.constant 0 : i32
    %c0_i32_1 = arith.constant 0 : i32
    return %c0_i32, %c0_i32_0 : i32, i32
  }
  func.func @transform_5(%arg0: i32) -> (i32, i32) {
    %c0_i32 = arith.constant 0 : i32
    %c0_i32_0 = arith.constant 0 : i32
    %c0_i32_1 = arith.constant 0 : i32
    return %c0_i32, %c0_i32_0 : i32, i32
  }
  func.func @transform_6(%arg0: i32) -> (i32, i32) {
    %c0_i32 = arith.constant 0 : i32
    %c0_i32_0 = arith.constant 0 : i32
    %c0_i32_1 = arith.constant 0 : i32
    return %c0_i32, %c0_i32_0 : i32, i32
  }
  func.func @transform_7(%arg0: i32) -> (i32, i32) {
    %c0_i32 = arith.constant 0 : i32
    %c0_i32_0 = arith.constant 0 : i32
    return %arg0, %c0_i32 : i32, i32
  }
}

</mosaic_0001>

<bundles_post_ra>
// kernel: tpu_custom_call.1
= control target key start
LH: loop header
LB: loop body
LE: loop exit
PB: predicated region body
PF: predicated region fallthrough
CT: control target
= control target key end

     0   :  { %12 = vsyncpa [#allocation3], 0  ;;  %s453_s0 = inlined_call_operand.hbm [shape: f32[4,32], index: 0, kind: input, shape index: {}]   ;;  %s454_s1 = inlined_call_operand.hbm [shape: f32[4,16], index: 1, kind: input, shape index: {}]   ;;  %s455_s2 = inlined_call_operand.hbm [shape: f32[32,32], index: 2, kind: input, shape index: {}]   ;;  %s456_s3 = inlined_call_operand.hbm [shape: f32[16,32], index: 3, kind: input, shape index: {}]   ;;  %s457_s4 = inlined_call_operand.vmem [shape: f32[1,32], index: 4, kind: input, shape index: {}]   ;;  %s458_s5 = inlined_call_operand.hbm [shape: f32[32,128], index: 5, kind: input, shape index: {}]   ;;  %s459_s6 = inlined_call_operand.vmem [shape: f32[1,128], index: 6, kind: input, shape index: {}]   ;;  %s460_s7 = inlined_call_operand.hbm [shape: f32[4,128], index: 7, kind: output, shape index: {}]  }
   0x1   :  { %13 = vsyncpa [#allocation6], 0 }
   0x2   :  { %14 = vsyncpa [#allocation9], 0  ;;  %s32_s26 = sshll.u32 %s454_s1, 4  ;;  %s33_s26 = int_to_ptr.hbm [resolvable:$true] %s32_s26 }
   0x3   :  { %15 = vsyncpa [#allocation4], 0  ;;  %s379_s27 = smov [#allocation5]   ;;  %s55_s8 = sshll.u32 %s456_s3, 4  ;;  %s56_s8 = int_to_ptr.hbm [resolvable:$true] %s55_s8 }
   0x4   :  { %s34_s28 = sshll.u32 %s379_s27, 4  ;;  %s380_s9 = smov [#allocation8]   ;;  %s35_s28 = int_to_ptr.vmem [resolvable:$true] %s34_s28 }
   0x5   :  { %37 = dma.hbm_to_vmem [thread:$0]  %s33_s26, 64, %s35_s28, [#allocation6]  }
   0x6   :  { %s57_s10 = sshll.u32 %s380_s9, 4  ;;  %s21_s13 = sshll.u32 %s453_s0, 4  ;;  %s58_s10 = int_to_ptr.vmem [resolvable:$true] %s57_s10  ;;  %s22_s13 = int_to_ptr.hbm [resolvable:$true] %s21_s13 }
   0x7   :  { %s381_s1 = smov 128   ;;  %s382_s14 = smov 8  }
   0x8   :  { %63 = dma.hbm_to_vmem [thread:$0]  %s56_s8, 256, %s58_s10, [#allocation9], %s381_s1, %s381_s1, %s382_s14  }
   0x9   :  { %s42_s17 = sshll.u32 %s455_s2, 4  ;;  %s383_s18 = smov [#allocation2]   ;;  %s43_s17 = int_to_ptr.hbm [resolvable:$true] %s42_s17 }
   0xa   :  { %s23_s19 = sshll.u32 %s383_s18, 4  ;;  %s384_s3 = smov [#allocation7]   ;;  %s24_s19 = int_to_ptr.vmem [resolvable:$true] %s23_s19 }
   0xb   :  { %26 = dma.hbm_to_vmem [thread:$0]  %s22_s13, 64, %s24_s19, [#allocation3]  }
   0xc   :  { %s44_s20 = sshll.u32 %s384_s3, 4  ;;  %s70_s0 = sshll.u32 %s458_s5, 4  ;;  %s45_s20 = int_to_ptr.vmem [resolvable:$true] %s44_s20  ;;  %s71_s0 = int_to_ptr.hbm [resolvable:$true] %s70_s0 }
   0xd   :  { %50 = dma.hbm_to_vmem [thread:$0]  %s43_s17, 512, %s45_s20, [#allocation6], %s381_s1, %s381_s1, %s382_s14  }
   0xe   :  { %s385_s23 = smov [#allocation10]  }
   0xf   :  { %s72_s24 = sshll.u32 %s385_s23, 4  ;;  %s73_s24 = int_to_ptr.vmem [resolvable:$true] %s72_s24 }
  0x10   :  { %78 = dma.hbm_to_vmem [thread:$0]  %s71_s0, 512, %s73_s24, [#allocation9], %s381_s1, %s381_s1, %s382_s14  }
  0x11   :  { %371 = dma.done.wait [#allocation3], 64  }
  0x12   :  { %372 = vsyncadd [#allocation3], 4294967232 }
  0x13   :  { %373 = dma.done.wait [#allocation6], 576  }
  0x14   :  { %374 = vsyncadd [#allocation6], 4294966720 }
  0x15   :  { %375 = dma.done.wait [#allocation9], 768  }
  0x16   :  { %376 = vsyncadd [#allocation9], 4294966528  ;;  %v105_v0 = vld [vmem:[#allocation7 + $0x18] sm:$0xff]  ;;  %v104_v1 = vld [vmem:[#allocation7 + $0x10] sm:$0xff]  ;;  %vm109_vm0 = vcmask 130048   ;;  %vm133_vm1 = vcmask 261120  }
  0x17   :  { %v108_v2 = vld [vmem:[#allocation8 + $0x8] sm:$0xff]  ;;  %149 = vmatpush.msra.mxu1 %v105_v0  ;;  %v107_v3 = vld [vmem:[#allocation8] sm:$0xff]  ;;  %v106_v5 = vld [vmem:[#allocation5] sm:$0xf]  ;;  %s386_s27 = smov [#allocation11]   ;;  %s202_s8 = sshll.u32 %s460_s7, 4  ;;  %s203_s8 = int_to_ptr.hbm [resolvable:$true] %s202_s8 }
  0x18   :  { %127 = vmatpush.msra.mxu0 %v108_v2  ;;  %v103_v4 = vld [vmem:[#allocation7 + $0x8] sm:$0xff]  ;;  %v102_v6 = vld [vmem:[#allocation7] sm:$0xff]  ;;  %v101_v7 = vld [vmem:[#allocation2] sm:$0xf]  ;;  %s200_s28 = sshll.u32 %s386_s27, 4  ;;  %s201_s28 = int_to_ptr.vmem [resolvable:$true] %s200_s28 }
  0x19   :  { %150 = vmatpush.msra.mxu1 %v104_v1  ;;  %v166_v8 = vld [vmem:[#allocation10 + $0x18] sm:$0xff]  ;;  %v165_v9 = vld [vmem:[#allocation10 + $0x10] sm:$0xff]  ;;  %v164_v10 = vld [vmem:[#allocation10 + $0x8] sm:$0xff] }
  0x1a   :  { %128 = vmatpush.msra.mxu0 %v107_v3  ;;  %186 = vmatpush.msra.mxu2 %v166_v8  ;;  %v163_v11 = vld [vmem:[#allocation10] sm:$0xff]  ;;  %v225_v13 = vld [vmem:[%s457_s4] ss:$0 sm:$0xff] }
  0x1b   :  { %214 = vmatmul.msk.f32.vlgmr.msra.gmra.mxu0 %vm109_vm0, %v106_v5  ;;  %151 = vmatpush.msra.mxu1 %v103_v4  ;;  %v226_v18 = vld [vmem:[%s459_s6] ss:$0 sm:$0xff] }
  0x1c   :  { %187 = vmatpush.msra.mxu2 %v165_v9 }
  0x1d   :  { %152 = vmatpush.msra.mxu1 %v102_v6 }
  0x1e   :  { %215 = vmatmul.msk.f32.vlgmr.msra.gmra.mxu1 %vm133_vm1, %v101_v7  ;;  %188 = vmatpush.msra.mxu2 %v164_v10 }
  0x20   :  { %189 = vmatpush.msra.mxu2 %v163_v11 }
  0x98   :  { %v130_v12 = vpop.f32.mrf.mxu0 }
  0x9b   :  { %v154_v14 = vpop.f32.mrf.mxu1 }
  0x9c   :  { %v155_v15 = vadd.f32 %v154_v14, %v130_v12 }
  0x9e   :  { %v161_v16 = vadd.f32 %v225_v13, %v155_v15 }
  0xa0   :  { %v162_v17 = vmax.f32 %v161_v16, 0.0 }
  0xa2   :  { %216 = vmatmul.msk.f32.vlgmr.msra.gmra.mxu2 %vm133_vm1, %v162_v17 }
 0x125   :  { %v191_v19 = vpop.f32.mrf.mxu2 }
 0x126   :  { %v192_v20 = vadd.f32 %v226_v18, %v191_v19 }
 0x128   :  { %194 = vst [vmem:[#allocation11] sm:$0xf] %v192_v20 }
 0x129   :  { %205 = dma.vmem_to_hbm [thread:$0]  %s201_s28, 64, %s203_s8, [#allocation4]  }
 0x12a   :  { %377 = dma.done.wait [#allocation4], 64  }
 0x12b   :  { %378 = vsyncadd [#allocation4], 4294967232 }
 0x12c   :  { %210 = vsyncpa [#allocation3], 1 }
 0x12d   :  { %211 = vsyncpa [#allocation6], 1 }
 0x12e   :  { %212 = vsyncpa [#allocation9], 1 }
 0x12f   :  { %213 = vsyncpa [#allocation4], 1 }

</bundles_post_ra>
